<compile_context>
chip_gen: v6e
topology: v6e:2x2x1
jax: 0.10.0
libtpu: 0.0.40
codegen_flags: <defaults>
</compile_context>

<pallas_src>
import jax
import jax.numpy as jnp
from jax.experimental import pallas as pl
from jax.experimental.pallas import tpu as pltpu


def _round_up(x, m):
    return ((x + m - 1) // m) * m


def _physical_vmem_bytes():
    """Per-TensorCore VMEM capacity; conservative v7x default if query fails."""
    try:
        return int(pltpu.get_tpu_info().vmem_capacity_bytes)
    except Exception:
        return 64 << 20  # v7x per-TC VMEM (smallest of the targets)


def prepare_patch_embedding_params(weight, bias):
    """One-time parameter prep (do NOT call per forward).

    weight: (emb, D) PyTorch Linear layout, D ordered (p1, p2, c).  bias: (emb,).
    Returns (wt_pad, bias_pad): wt_pad (D, E_pad) bf16, bias_pad (1, E_pad) f32.
    Only the emb axis is zero-padded to a multiple of 128 (lane-dense unmasked
    stores); D is the matmul K dim and is passed as one full block.
    """
    emb, d = weight.shape
    e_pad = _round_up(emb, 128)
    wt = jnp.transpose(weight)                                # (D, emb)
    wt = jnp.pad(wt, ((0, 0), (0, e_pad - emb)))
    bias_pad = jnp.pad(bias, (0, e_pad - emb)).reshape(1, e_pad)
    return wt.astype(jnp.bfloat16), bias_pad.astype(jnp.float32)


def _patch_linear_kernel(x_ref, w_ref, b_ref, o_ref):
    # x_ref: (tm, D)     bf16
    # w_ref: (D, E_pad)  bf16  (VMEM-resident, constant index -> single buffer)
    # b_ref: (1, E_pad)  f32   (VMEM-resident)
    # o_ref: (tm, E_pad) bf16 (default) or f32
    # Single K block: for ViT-sized D (<~2k) this avoids an f32 accumulator
    # read-modify-write (matters on v5e's single vst slot).  f32 VPU epilogue.
    acc = jnp.dot(x_ref[...], w_ref[...], preferred_element_type=jnp.float32)
    o_ref[...] = (acc + b_ref[...]).astype(o_ref.dtype)


def _projection(patches, wt_pad, bias_pad, *, tm, out_dtype, vmem_limit,
                single_buffer_resident):
    m_pad, d = patches.shape
    _, e_pad = wt_pad.shape
    out_bytes = jnp.dtype(out_dtype).itemsize
    resident_kw = (dict(pipeline_mode=pl.Buffered(1))
                   if single_buffer_resident else {})
    return pl.pallas_call(
        _patch_linear_kernel,
        out_shape=jax.ShapeDtypeStruct((m_pad, e_pad), out_dtype),
        grid=(pl.cdiv(m_pad, tm),),
        in_specs=[
            pl.BlockSpec((tm, d), lambda i: (i, 0)),
            pl.BlockSpec((d, e_pad), lambda i: (0, 0), **resident_kw),
            pl.BlockSpec((1, e_pad), lambda i: (0, 0), **resident_kw),
        ],
        out_specs=pl.BlockSpec((tm, e_pad), lambda i: (i, 0)),
        compiler_params=pltpu.CompilerParams(
            dimension_semantics=("parallel",),      # megacore-shard M on v7x
            vmem_limit_bytes=int(vmem_limit),
        ),
        cost_estimate=pl.CostEstimate(
            flops=2 * m_pad * d * e_pad,
            transcendentals=0,
            bytes_accessed=(m_pad * d * 2 + d * e_pad * 2 + e_pad * 4
                            + m_pad * e_pad * out_bytes),
        ),
    )(patches, wt_pad, bias_pad)


def patch_embedding(x, wt_pad, bias_pad, patch_size, emb_size, *, tm=1024,
                    out_dtype=jnp.bfloat16, keep_padded=False):
    """x: (b, c, H, W).  wt_pad/bias_pad from prepare_patch_embedding_params.

    Returns (b, num_patches, emb_size) in `out_dtype` (bf16 by default).
    keep_padded=True returns (b, num_patches, E_pad) (tail columns are zero),
    avoiding a full-copy lane slice when emb_size is not a multiple of 128.
    """
    b, c, H, W = x.shape
    h, w = H // patch_size, W // patch_size
    d = patch_size * patch_size * c
    d_w, e_pad = wt_pad.shape
    assert d_w == d, (d_w, d)
    m = b * h * w
    m_pad = _round_up(m, 16)          # bf16 sublane packing on the last tile

    # Rearrange 'b c (h p1) (w p2) -> (b h w) (p1 p2 c)': one fused XLA
    # transpose+convert pass (reads x f32, writes patches bf16).
    # TODO(synk): fuse into the kernel once Mosaic supports the needed rank-5
    # transpose / small-minor reshape (see header comment).
    patches = x.astype(jnp.bfloat16).reshape(b, c, h, patch_size, w, patch_size)
    patches = jnp.transpose(patches, (0, 2, 4, 3, 5, 1)).reshape(m, d)
    if m_pad != m:
        patches = jnp.pad(patches, ((0, m_pad - m), (0, 0)))

    # Per-generation VMEM budget: physical minus ~24 MiB headroom
    # (~40 MiB on v7x's 64 MiB/TC, ~104 MiB on v5e/v6e's 128 MiB).
    out_bytes = jnp.dtype(out_dtype).itemsize
    vmem_cap = max(_physical_vmem_bytes() - (24 << 20), 16 << 20)
    resident_bytes = d * e_pad * 2 + 8 * e_pad * 4       # 1x weight + bias
    per_row_bytes = 2 * (d * 2) + 2 * (e_pad * out_bytes)  # 2x x-tile + 2x out-tile

    tm = min(tm, m_pad)
    tm_fit = (int(vmem_cap / 1.5) - resident_bytes) // max(per_row_bytes, 1)
    if tm > 128 and tm_fit >= 128:
        tm = min(tm, (int(tm_fit) // 128) * 128)
    vmem_needed = resident_bytes + tm * per_row_bytes
    # 1.5x slack: compiler-internal scratch + the double-buffered-resident fallback.
    vmem_limit = min(max(int(1.5 * vmem_needed), 16 << 20), vmem_cap)

    try:
        out = _projection(patches, wt_pad, bias_pad, tm=tm, out_dtype=out_dtype,
                          vmem_limit=vmem_limit, single_buffer_resident=True)
    except Exception:
        # TODO(synk): drop this fallback once pl.Buffered(1) on constant-index
        # resident operands is confirmed on all deployed jaxlib versions.
        out = _projection(patches, wt_pad, bias_pad, tm=tm, out_dtype=out_dtype,
                          vmem_limit=vmem_limit, single_buffer_resident=False)

    out = out[:m]                     # cheap row-prefix slice of the padding
    if keep_padded:
        return out.reshape(b, h * w, e_pad)
    # Lane slice below is a real copy only when emb_size % 128 != 0 — prefer
    # keep_padded=True downstream in that case (extra columns are zeros).
    return out[:, :emb_size].reshape(b, h * w, emb_size)


if __name__ == "__main__":
    # Small shapes consistent with the module: in_channels=4, patch_size=8,
    # emb_size=32, spatial 16x16 -> 4 patches of dim 8*8*4 = 256.
    in_channels = 4
    patch_size = 8
    emb_size = 32
    batch = 2
    H = W = 16

    key = jax.random.PRNGKey(0)
    kx, kw, kb = jax.random.split(key, 3)

    x = jax.random.normal(kx, (batch, in_channels, H, W), dtype=jnp.float32)

    # Deterministic Linear params (PyTorch layout: weight (emb, in_features)).
    in_features = patch_size * patch_size * in_channels
    bound = 1.0 / (in_features ** 0.5)
    weight = jax.random.uniform(kw, (emb_size, in_features), minval=-bound,
                                maxval=bound, dtype=jnp.float32)
    bias = jax.random.uniform(kb, (emb_size,), minval=-bound, maxval=bound,
                              dtype=jnp.float32)

    wt_pad, bias_pad = prepare_patch_embedding_params(weight, bias)
    out = patch_embedding(x, wt_pad, bias_pad, patch_size, emb_size)
    out = jax.block_until_ready(out)

    # Pure-JAX references of the same semantics.
    ref_patches = x.reshape(batch, in_channels, H // patch_size, patch_size,
                            W // patch_size, patch_size)
    ref_patches = jnp.transpose(ref_patches, (0, 2, 4, 3, 5, 1)).reshape(
        batch, -1, in_features)
    # (a) what the bf16-MXU kernel computes (before the final bf16 store).
    ref_bf16 = (ref_patches.astype(jnp.bfloat16).astype(jnp.float32)
                @ weight.T.astype(jnp.bfloat16).astype(jnp.float32) + bias)
    # (b) the original f32 PyTorch module math.
    ref_f32 = ref_patches @ weight.T + bias

    n_patches = (H // patch_size) * (W // patch_size)
    assert out.shape == (batch, n_patches, emb_size), out.shape
    assert out.dtype == jnp.bfloat16, out.dtype
    out_f32 = out.astype(jnp.float32)
    assert jnp.allclose(out_f32, ref_bf16, atol=1e-2, rtol=1e-2), \
        float(jnp.max(jnp.abs(out_f32 - ref_bf16)))
    assert jnp.allclose(out_f32, ref_f32, atol=6e-2, rtol=6e-2), \
        float(jnp.max(jnp.abs(out_f32 - ref_f32)))

    # Padded-layout path: identical values in the first emb_size lanes.
    out_pad = jax.block_until_ready(
        patch_embedding(x, wt_pad, bias_pad, patch_size, emb_size,
                        keep_padded=True))
    assert out_pad.shape == (batch, n_patches, _round_up(emb_size, 128))
    assert jnp.allclose(out_pad[..., :emb_size].astype(jnp.float32), out_f32)

    print("KERNEL_OK")
</pallas_src>

<mosaic_0001>
module attributes {stable_mosaic.version = 11 : i64} {
  func.func @_patch_linear_kernel(%arg0: i32, %arg1: memref<16x256xbf16, #tpu.memory_space<vmem>>, %arg2: memref<256x128xbf16, #tpu.memory_space<vmem>>, %arg3: memref<1x128xf32, #tpu.memory_space<vmem>>, %arg4: memref<16x128xbf16, #tpu.memory_space<vmem>>) attributes {dimension_semantics = [#tpu.dimension_semantics<parallel>], iteration_bounds = array<i64: 1>, scalar_prefetch = 0 : i64, scratch_operands = 0 : i64, tpu.core_type = #tpu.core_type<tc>, window_params = [{transform_indices = @transform_0, window_bounds = array<i64: 16, 256>}, {pipeline_mode = #tpu.pipeline_mode<synchronous>, transform_indices = @transform_1, window_bounds = array<i64: 256, 128>}, {pipeline_mode = #tpu.pipeline_mode<synchronous>, transform_indices = @transform_2, window_bounds = array<i64: 1, 128>}, {transform_indices = @transform_3, window_bounds = array<i64: 16, 128>}]} {
    %c0 = arith.constant 0 : index
    %c0_0 = arith.constant 0 : index
    %0 = vector.load %arg1[%c0, %c0_0] : memref<16x256xbf16, #tpu.memory_space<vmem>>, vector<16x256xbf16>
    %c0_1 = arith.constant 0 : index
    %c0_2 = arith.constant 0 : index
    %1 = vector.load %arg2[%c0_1, %c0_2] : memref<256x128xbf16, #tpu.memory_space<vmem>>, vector<256x128xbf16>
    %cst = arith.constant dense<0.000000e+00> : vector<16x128xf32>
    %2 = tpu.matmul %0, %1, %cst {dimension_numbers = #tpu.dot_dimension_numbers<[1], [0], [0], [1], [0, 0, 1, 1], [], []>} : vector<16x256xbf16>, vector<256x128xbf16>, vector<16x128xf32> -> vector<16x128xf32>
    %c0_3 = arith.constant 0 : index
    %c0_4 = arith.constant 0 : index
    %3 = vector.load %arg3[%c0_3, %c0_4] : memref<1x128xf32, #tpu.memory_space<vmem>>, vector<1x128xf32>
    %4 = vector.broadcast %3 : vector<1x128xf32> to vector<16x128xf32>
    %5 = arith.addf %2, %4 : vector<16x128xf32>
    %6 = arith.truncf %5 : vector<16x128xf32> to vector<16x128xbf16>
    %c0_5 = arith.constant 0 : index
    %c0_6 = arith.constant 0 : index
    %7 = vector.load %arg4[%c0_5, %c0_6] : memref<16x128xbf16, #tpu.memory_space<vmem>>, vector<16x128xbf16>
    tpu.vector_store %arg4[%c0_5, %c0_6], %6 {strides = array<i32>} : memref<16x128xbf16, #tpu.memory_space<vmem>>, vector<16x128xbf16>,
    return
  }
  func.func @transform_0(%arg0: i32) -> (i32, i32) {
    %c0_i32 = arith.constant 0 : i32
    %c0_i32_0 = arith.constant 0 : i32
    return %arg0, %c0_i32 : i32, i32
  }
  func.func @transform_1(%arg0: i32) -> (i32, i32) {
    %c0_i32 = arith.constant 0 : i32
    %c0_i32_0 = arith.constant 0 : i32
    %c0_i32_1 = arith.constant 0 : i32
    return %c0_i32, %c0_i32_0 : i32, i32
  }
  func.func @transform_2(%arg0: i32) -> (i32, i32) {
    %c0_i32 = arith.constant 0 : i32
    %c0_i32_0 = arith.constant 0 : i32
    %c0_i32_1 = arith.constant 0 : i32
    return %c0_i32, %c0_i32_0 : i32, i32
  }
  func.func @transform_3(%arg0: i32) -> (i32, i32) {
    %c0_i32 = arith.constant 0 : i32
    %c0_i32_0 = arith.constant 0 : i32
    return %arg0, %c0_i32 : i32, i32
  }
}

module attributes {stable_mosaic.version = 11 : i64} {
  func.func @_patch_linear_kernel(%arg0: i32, %arg1: memref<16x256xbf16, #tpu.memory_space<vmem>>, %arg2: memref<256x128xbf16, #tpu.memory_space<vmem>>, %arg3: memref<1x128xf32, #tpu.memory_space<vmem>>, %arg4: memref<16x128xbf16, #tpu.memory_space<vmem>>) attributes {dimension_semantics = [#tpu.dimension_semantics<parallel>], iteration_bounds = array<i64: 1>, scalar_prefetch = 0 : i64, scratch_operands = 0 : i64, tpu.core_type = #tpu.core_type<tc>, window_params = [{transform_indices = @transform_0, window_bounds = array<i64: 16, 256>}, {pipeline_mode = #tpu.pipeline_mode<synchronous>, transform_indices = @transform_1, window_bounds = array<i64: 256, 128>}, {pipeline_mode = #tpu.pipeline_mode<synchronous>, transform_indices = @transform_2, window_bounds = array<i64: 1, 128>}, {transform_indices = @transform_3, window_bounds = array<i64: 16, 128>}]} {
    %c0 = arith.constant 0 : index
    %c0_0 = arith.constant 0 : index
    %0 = vector.load %arg1[%c0, %c0_0] : memref<16x256xbf16, #tpu.memory_space<vmem>>, vector<16x256xbf16>
    %c0_1 = arith.constant 0 : index
    %c0_2 = arith.constant 0 : index
    %1 = vector.load %arg2[%c0_1, %c0_2] : memref<256x128xbf16, #tpu.memory_space<vmem>>, vector<256x128xbf16>
    %cst = arith.constant dense<0.000000e+00> : vector<16x128xf32>
    %2 = tpu.matmul %0, %1, %cst {dimension_numbers = #tpu.dot_dimension_numbers<[1], [0], [0], [1], [0, 0, 1, 1], [], []>} : vector<16x256xbf16>, vector<256x128xbf16>, vector<16x128xf32> -> vector<16x128xf32>
    %c0_3 = arith.constant 0 : index
    %c0_4 = arith.constant 0 : index
    %3 = vector.load %arg3[%c0_3, %c0_4] : memref<1x128xf32, #tpu.memory_space<vmem>>, vector<1x128xf32>
    %4 = vector.broadcast %3 : vector<1x128xf32> to vector<16x128xf32>
    %5 = arith.addf %2, %4 : vector<16x128xf32>
    %6 = arith.truncf %5 : vector<16x128xf32> to vector<16x128xbf16>
    %c0_5 = arith.constant 0 : index
    %c0_6 = arith.constant 0 : index
    %7 = vector.load %arg4[%c0_5, %c0_6] : memref<16x128xbf16, #tpu.memory_space<vmem>>, vector<16x128xbf16>
    tpu.vector_store %arg4[%c0_5, %c0_6], %6 {strides = array<i32>} : memref<16x128xbf16, #tpu.memory_space<vmem>>, vector<16x128xbf16>,
    return
  }
  func.func @transform_0(%arg0: i32) -> (i32, i32) {
    %c0_i32 = arith.constant 0 : i32
    %c0_i32_0 = arith.constant 0 : i32
    return %arg0, %c0_i32 : i32, i32
  }
  func.func @transform_1(%arg0: i32) -> (i32, i32) {
    %c0_i32 = arith.constant 0 : i32
    %c0_i32_0 = arith.constant 0 : i32
    %c0_i32_1 = arith.constant 0 : i32
    return %c0_i32, %c0_i32_0 : i32, i32
  }
  func.func @transform_2(%arg0: i32) -> (i32, i32) {
    %c0_i32 = arith.constant 0 : i32
    %c0_i32_0 = arith.constant 0 : i32
    %c0_i32_1 = arith.constant 0 : i32
    return %c0_i32, %c0_i32_0 : i32, i32
  }
  func.func @transform_3(%arg0: i32) -> (i32, i32) {
    %c0_i32 = arith.constant 0 : i32
    %c0_i32_0 = arith.constant 0 : i32
    return %arg0, %c0_i32 : i32, i32
  }
}

</mosaic_0001>

<bundles_post_ra>
// kernel: tpu_custom_call.1
= control target key start
LH: loop header
LB: loop body
LE: loop exit
PB: predicated region body
PF: predicated region fallthrough
CT: control target
= control target key end

     0   :  { %8 = vsyncpa [#allocation3], 0  ;;  %s447_s0 = inlined_call_operand.hbm [shape: bf16[16,256], index: 0, kind: input, shape index: {}]   ;;  %s448_s1 = inlined_call_operand.hbm [shape: bf16[256,128], index: 1, kind: input, shape index: {}]   ;;  %s449_s2 = inlined_call_operand.vmem [shape: f32[1,128], index: 2, kind: input, shape index: {}]   ;;  %s450_s3 = inlined_call_operand.hbm [shape: bf16[16,128], index: 3, kind: output, shape index: {}]  }
   0x1   :  { %9 = vsyncpa [#allocation6], 0 }
   0x2   :  { %10 = vsyncpa [#allocation4], 0  ;;  %s402_s12 = smov [#allocation2]  }
   0x3   :  { %s16_s13 = sshll.u32 %s402_s12, 4  ;;  %s17_s13 = int_to_ptr.vmem [resolvable:$true] %s16_s13 }
   0x4   :  { %s344_s14 = scalar_lea.vmem %s17_s13, 256  ;;  %p349_p1 = scmp.lt.s32.totalorder %s17_s13, %s17_s13 }
   0x5   :  { %p345_p0 = scmp.ne.s32.totalorder %s17_s13, %s344_s14  ;;  %p350_p2 = scmp.lt.s32.totalorder %s344_s14, %s344_s14 }
   0x7   :  { %p351_p3 = por %p350_p2, %p349_p1 }
   0x9   :  { %p352_p4 = pnand %p351_p3, %p345_p0 }
   0xb   :  { %355 = shalt.err (!%p352_p4)
}
   0xc   :  { %s403_s15 = smov 128   ;;  %s404_s16 = smov 8  }
   0xd   :  { %22 = dma.hbm_to_vmem [thread:$0]  %s447_s0, 256, %s17_s13, [#allocation3], %s403_s15, %s403_s15, %s404_s16  }
   0xe   :  { %s405_s19 = smov [#allocation5]  }
   0xf   :  { %s28_s20 = sshll.u32 %s405_s19, 4  ;;  %s29_s20 = int_to_ptr.vmem [resolvable:$true] %s28_s20 }
  0x10   :  { %s364_s21 = scalar_lea.vmem %s29_s20, 2048  ;;  %p369_p6 = scmp.lt.s32.totalorder %s29_s20, %s29_s20 }
  0x11   :  { %p365_p5 = scmp.ne.s32.totalorder %s29_s20, %s364_s21  ;;  %p370_p7 = scmp.lt.s32.totalorder %s364_s21, %s364_s21 }
  0x13   :  { %p371_p8 = por %p370_p7, %p369_p6 }
  0x15   :  { %p372_p9 = pnand %p371_p8, %p365_p5 }
  0x17   :  { %375 = shalt.err (!%p372_p9)
}
  0x18   :  { %s406_s22 = smov 64   ;;  %s407_s23 = smov 4  }
  0x19   :  { %34 = dma.hbm_to_vmem [thread:$0]  %s448_s1, 2048, %s29_s20, [#allocation6], %s406_s22, %s406_s22, %s407_s23  }
  0x1a   :  { %396 = dma.done.wait [#allocation3], 256  }
  0x1b   :  { %397 = vsyncadd [#allocation3], 4294967040 }
  0x1c   :  { %398 = dma.done.wait [#allocation6], 2048  }
  0x1d   :  { %399 = vsyncadd [#allocation6], 4294965248  ;;  %v317_v0 = vld [vmem:[#allocation5 + $0x78] sm:$0xff]   ;;  %v319_v2 = vld [vmem:[#allocation5 + $0x70] sm:$0xff]   ;;  %s408_s26 = smov [#allocation7]  }
  0x1e   :  { %v318_v1 = vld [vmem:[#allocation5 + $0x38] sm:$0xff]   ;;  %288 = vmatprep.subr.bf16.mxu0 %v317_v0  ;;  %v320_v3 = vld [vmem:[#allocation5 + $0x30] sm:$0xff]   ;;  %v321_v4 = vld [vmem:[#allocation5 + $0x68] sm:$0xff]   ;;  %s247_s27 = sshll.u32 %s408_s26, 4  ;;  %s248_s27 = int_to_ptr.vmem [resolvable:$true] %s247_s27 }
  0x1f   :  { %289 = vmatpush3.bf16.msra.mxu0 %v318_v1  ;;  %v322_v5 = vld [vmem:[#allocation5 + $0x28] sm:$0xff]   ;;  %v323_v6 = vld [vmem:[#allocation5 + $0x60] sm:$0xff]   ;;  %v325_v8 = vld [vmem:[#allocation5 + $0x58] sm:$0xff]   ;;  %s376_s28 = scalar_lea.vmem %s248_s27, 128  ;;  %p381_p11 = scmp.lt.s32.totalorder %s248_s27, %s248_s27 }
  0x20   :  { %290 = vmatprep.subr.bf16.mxu0 %v319_v2  ;;  %v324_v7 = vld [vmem:[#allocation5 + $0x20] sm:$0xff]   ;;  %v326_v9 = vld [vmem:[#allocation5 + $0x18] sm:$0xff]   ;;  %v327_v10 = vld [vmem:[#allocation5 + $0x50] sm:$0xff]   ;;  %p377_p10 = scmp.ne.s32.totalorder %s248_s27, %s376_s28  ;;  %p382_p12 = scmp.lt.s32.totalorder %s376_s28, %s376_s28 }
  0x21   :  { %v335_v11 = vld [vmem:[#allocation2 + $0x4] ss:$8 sps:$4 sm:$0xff]   ;;  %v329_v13 = vld [vmem:[#allocation5 + $0x48] sm:$0xff]   ;;  %v331_v15 = vld [vmem:[#allocation5 + $0x40] sm:$0xff]  }
  0x22   :  { %v328_v12 = vld [vmem:[#allocation5 + $0x10] sm:$0xff]   ;;  %223 = vmatprep.mubr.bf16.mxu0 %v335_v11  ;;  %v330_v14 = vld [vmem:[#allocation5 + $0x8] sm:$0xff]   ;;  %v332_v16 = vld [vmem:[#allocation5] sm:$0xff]   ;;  %p383_p13 = por %p382_p12, %p381_p11 }
  0x23   :  { %291 = vmatpush3.bf16.msra.mxu0 %v320_v3  ;;  %v333_v17 = vld [vmem:[#allocation2] ss:$8 sps:$4 sm:$0xff]  }
  0x24   :  { %292 = vmatprep.subr.bf16.mxu0 %v321_v4  ;;  %v260_v22 = vld [vmem:[%s449_s2] ss:$0 sm:$0xff]  ;;  %p384_p0 = pnand %p383_p13, %p377_p10 }
  0x27   :  { %293 = vmatpush3.bf16.msra.mxu0 %v322_v5 }
  0x28   :  { %294 = vmatprep.subr.bf16.mxu0 %v323_v6 }
  0x2b   :  { %295 = vmatpush3.bf16.msra.mxu0 %v324_v7 }
  0x2c   :  { %296 = vmatprep.subr.bf16.mxu0 %v325_v8 }
  0x2f   :  { %297 = vmatpush3.bf16.msra.mxu0 %v326_v9 }
  0x30   :  { %298 = vmatprep.subr.bf16.mxu0 %v327_v10 }
  0x33   :  { %299 = vmatpush3.bf16.msra.mxu0 %v328_v12 }
  0x34   :  { %300 = vmatprep.subr.bf16.mxu0 %v329_v13 }
  0x37   :  { %301 = vmatpush3.bf16.msra.mxu0 %v330_v14 }
  0x38   :  { %302 = vmatprep.subr.bf16.mxu0 %v331_v15 }
  0x3b   :  { %303 = vmatpush3.bf16.msra.mxu0 %v332_v16 }
  0x3e   :  { %224 = vmatmul.mubr.bf16.vlgmr.msra.gmra.mxu0 %v333_v17 }
  0xfe   :  { %v304_v18 = vpop.f32.mrf.mxu0 }
 0x100   :  { %v305_v19 = vpop.f32.mrf.mxu0 }
 0x101   :  { %v306_v21 = vadd.f32 %v305_v19, %v304_v18 }
 0x102   :  { %v307_v20 = vpop.f32.mrf.mxu0 }
 0x103   :  { %v226_v25 = vadd.f32 %v306_v21, %v260_v22 }
 0x104   :  { %v308_v23 = vpop.f32.mrf.mxu0 }
 0x105   :  { %v309_v24 = vadd.f32 %v308_v23, %v307_v20 }
 0x107   :  { %v229_v26 = vadd.f32 %v309_v24, %v260_v22 }
 0x109   :  { %v286_v27 = vpack.c.bf16 %v229_v26, %v226_v25 }
 0x10b   :  { %287 = vst [vmem:[#allocation7] sm:$0xff] %v286_v27  }
 0x10c   :  { %387 = shalt.err (!%p384_p0)
}
 0x10d   :  { %253 = dma.vmem_to_hbm [thread:$0]  %s248_s27, 128, %s450_s3, [#allocation4], %s406_s22, %s406_s22, %s407_s23  }
 0x10e   :  { %400 = dma.done.wait [#allocation4], 128  }
 0x10f   :  { %401 = vsyncadd [#allocation4], 4294967168 }
 0x110   :  { %257 = vsyncpa [#allocation3], 1 }
 0x111   :  { %258 = vsyncpa [#allocation6], 1 }
 0x112   :  { %259 = vsyncpa [#allocation4], 1 }

// kernel: tpu_custom_call.1
= control target key start
LH: loop header
LB: loop body
LE: loop exit
PB: predicated region body
PF: predicated region fallthrough
CT: control target
= control target key end

     0   :  { %8 = vsyncpa [#allocation3], 0  ;;  %s447_s0 = inlined_call_operand.hbm [shape: bf16[16,256], index: 0, kind: input, shape index: {}]   ;;  %s448_s1 = inlined_call_operand.hbm [shape: bf16[256,128], index: 1, kind: input, shape index: {}]   ;;  %s449_s2 = inlined_call_operand.vmem [shape: f32[1,128], index: 2, kind: input, shape index: {}]   ;;  %s450_s3 = inlined_call_operand.hbm [shape: bf16[16,128], index: 3, kind: output, shape index: {}]  }
   0x1   :  { %9 = vsyncpa [#allocation6], 0 }
   0x2   :  { %10 = vsyncpa [#allocation4], 0  ;;  %s402_s12 = smov [#allocation2]  }
   0x3   :  { %s16_s13 = sshll.u32 %s402_s12, 4  ;;  %s17_s13 = int_to_ptr.vmem [resolvable:$true] %s16_s13 }
   0x4   :  { %s344_s14 = scalar_lea.vmem %s17_s13, 256  ;;  %p349_p1 = scmp.lt.s32.totalorder %s17_s13, %s17_s13 }
   0x5   :  { %p345_p0 = scmp.ne.s32.totalorder %s17_s13, %s344_s14  ;;  %p350_p2 = scmp.lt.s32.totalorder %s344_s14, %s344_s14 }
   0x7   :  { %p351_p3 = por %p350_p2, %p349_p1 }
   0x9   :  { %p352_p4 = pnand %p351_p3, %p345_p0 }
   0xb   :  { %355 = shalt.err (!%p352_p4)
}
   0xc   :  { %s403_s15 = smov 128   ;;  %s404_s16 = smov 8  }
   0xd   :  { %22 = dma.hbm_to_vmem [thread:$0]  %s447_s0, 256, %s17_s13, [#allocation3], %s403_s15, %s403_s15, %s404_s16  }
   0xe   :  { %s405_s19 = smov [#allocation5]  }
   0xf   :  { %s28_s20 = sshll.u32 %s405_s19, 4  ;;  %s29_s20 = int_to_ptr.vmem [resolvable:$true] %s28_s20 }
  0x10   :  { %s364_s21 = scalar_lea.vmem %s29_s20, 2048  ;;  %p369_p6 = scmp.lt.s32.totalorder %s29_s20, %s29_s20 }
  0x11   :  { %p365_p5 = scmp.ne.s32.totalorder %s29_s20, %s364_s21  ;;  %p370_p7 = scmp.lt.s32.totalorder %s364_s21, %s364_s21 }
  0x13   :  { %p371_p8 = por %p370_p7, %p369_p6 }
  0x15   :  { %p372_p9 = pnand %p371_p8, %p365_p5 }
  0x17   :  { %375 = shalt.err (!%p372_p9)
}
  0x18   :  { %s406_s22 = smov 64   ;;  %s407_s23 = smov 4  }
  0x19   :  { %34 = dma.hbm_to_vmem [thread:$0]  %s448_s1, 2048, %s29_s20, [#allocation6], %s406_s22, %s406_s22, %s407_s23  }
  0x1a   :  { %396 = dma.done.wait [#allocation3], 256  }
  0x1b   :  { %397 = vsyncadd [#allocation3], 4294967040 }
  0x1c   :  { %398 = dma.done.wait [#allocation6], 2048  }
  0x1d   :  { %399 = vsyncadd [#allocation6], 4294965248  ;;  %v317_v0 = vld [vmem:[#allocation5 + $0x78] sm:$0xff]   ;;  %v319_v2 = vld [vmem:[#allocation5 + $0x70] sm:$0xff]   ;;  %s408_s26 = smov [#allocation7]  }
  0x1e   :  { %v318_v1 = vld [vmem:[#allocation5 + $0x38] sm:$0xff]   ;;  %288 = vmatprep.subr.bf16.mxu0 %v317_v0  ;;  %v320_v3 = vld [vmem:[#allocation5 + $0x30] sm:$0xff]   ;;  %v321_v4 = vld [vmem:[#allocation5 + $0x68] sm:$0xff]   ;;  %s247_s27 = sshll.u32 %s408_s26, 4  ;;  %s248_s27 = int_to_ptr.vmem [resolvable:$true] %s247_s27 }
  0x1f   :  { %289 = vmatpush3.bf16.msra.mxu0 %v318_v1  ;;  %v322_v5 = vld [vmem:[#allocation5 + $0x28] sm:$0xff]   ;;  %v323_v6 = vld [vmem:[#allocation5 + $0x60] sm:$0xff]   ;;  %v325_v8 = vld [vmem:[#allocation5 + $0x58] sm:$0xff]   ;;  %s376_s28 = scalar_lea.vmem %s248_s27, 128  ;;  %p381_p11 = scmp.lt.s32.totalorder %s248_s27, %s248_s27 }
  0x20   :  { %290 = vmatprep.subr.bf16.mxu0 %v319_v2  ;;  %v324_v7 = vld [vmem:[#allocation5 + $0x20] sm:$0xff]   ;;  %v326_v9 = vld [vmem:[#allocation5 + $0x18] sm:$0xff]   ;;  %v327_v10 = vld [vmem:[#allocation5 + $0x50] sm:$0xff]   ;;  %p377_p10 = scmp.ne.s32.totalorder %s248_s27, %s376_s28  ;;  %p382_p12 = scmp.lt.s32.totalorder %s376_s28, %s376_s28 }
  0x21   :  { %v335_v11 = vld [vmem:[#allocation2 + $0x4] ss:$8 sps:$4 sm:$0xff]   ;;  %v329_v13 = vld [vmem:[#allocation5 + $0x48] sm:$0xff]   ;;  %v331_v15 = vld [vmem:[#allocation5 + $0x40] sm:$0xff]  }
  0x22   :  { %v328_v12 = vld [vmem:[#allocation5 + $0x10] sm:$0xff]   ;;  %223 = vmatprep.mubr.bf16.mxu0 %v335_v11  ;;  %v330_v14 = vld [vmem:[#allocation5 + $0x8] sm:$0xff]   ;;  %v332_v16 = vld [vmem:[#allocation5] sm:$0xff]   ;;  %p383_p13 = por %p382_p12, %p381_p11 }
  0x23   :  { %291 = vmatpush3.bf16.msra.mxu0 %v320_v3  ;;  %v333_v17 = vld [vmem:[#allocation2] ss:$8 sps:$4 sm:$0xff]  }
  0x24   :  { %292 = vmatprep.subr.bf16.mxu0 %v321_v4  ;;  %v260_v22 = vld [vmem:[%s449_s2] ss:$0 sm:$0xff]  ;;  %p384_p0 = pnand %p383_p13, %p377_p10 }
  0x27   :  { %293 = vmatpush3.bf16.msra.mxu0 %v322_v5 }
  0x28   :  { %294 = vmatprep.subr.bf16.mxu0 %v323_v6 }
  0x2b   :  { %295 = vmatpush3.bf16.msra.mxu0 %v324_v7 }
  0x2c   :  { %296 = vmatprep.subr.bf16.mxu0 %v325_v8 }
  0x2f   :  { %297 = vmatpush3.bf16.msra.mxu0 %v326_v9 }
  0x30   :  { %298 = vmatprep.subr.bf16.mxu0 %v327_v10 }
  0x33   :  { %299 = vmatpush3.bf16.msra.mxu0 %v328_v12 }
  0x34   :  { %300 = vmatprep.subr.bf16.mxu0 %v329_v13 }
  0x37   :  { %301 = vmatpush3.bf16.msra.mxu0 %v330_v14 }
  0x38   :  { %302 = vmatprep.subr.bf16.mxu0 %v331_v15 }
  0x3b   :  { %303 = vmatpush3.bf16.msra.mxu0 %v332_v16 }
  0x3e   :  { %224 = vmatmul.mubr.bf16.vlgmr.msra.gmra.mxu0 %v333_v17 }
  0xfe   :  { %v304_v18 = vpop.f32.mrf.mxu0 }
 0x100   :  { %v305_v19 = vpop.f32.mrf.mxu0 }
 0x101   :  { %v306_v21 = vadd.f32 %v305_v19, %v304_v18 }
 0x102   :  { %v307_v20 = vpop.f32.mrf.mxu0 }
 0x103   :  { %v226_v25 = vadd.f32 %v306_v21, %v260_v22 }
 0x104   :  { %v308_v23 = vpop.f32.mrf.mxu0 }
 0x105   :  { %v309_v24 = vadd.f32 %v308_v23, %v307_v20 }
 0x107   :  { %v229_v26 = vadd.f32 %v309_v24, %v260_v22 }
 0x109   :  { %v286_v27 = vpack.c.bf16 %v229_v26, %v226_v25 }
 0x10b   :  { %287 = vst [vmem:[#allocation7] sm:$0xff] %v286_v27  }
 0x10c   :  { %387 = shalt.err (!%p384_p0)
}
 0x10d   :  { %253 = dma.vmem_to_hbm [thread:$0]  %s248_s27, 128, %s450_s3, [#allocation4], %s406_s22, %s406_s22, %s407_s23  }
 0x10e   :  { %400 = dma.done.wait [#allocation4], 128  }
 0x10f   :  { %401 = vsyncadd [#allocation4], 4294967168 }
 0x110   :  { %257 = vsyncpa [#allocation3], 1 }
 0x111   :  { %258 = vsyncpa [#allocation6], 1 }
 0x112   :  { %259 = vsyncpa [#allocation4], 1 }

</bundles_post_ra>
